<compile_context>
chip_gen: v7x
topology: tpu7x:2x2x1
jax: 0.10.0
libtpu: 0.0.40
codegen_flags: <defaults>
</compile_context>

<pallas_src>
import functools
import math

import jax
import jax.numpy as jnp
import numpy as np
from jax import lax
from jax.experimental import pallas as pl
from jax.experimental.pallas import tpu as pltpu

# CompilerParams was called TPUCompilerParams in older jax releases.
_CompilerParams = getattr(pltpu, "CompilerParams", None) or getattr(
    pltpu, "TPUCompilerParams")


# ------------------------------ Pallas kernel ------------------------------ #

def _lora_convt_kernel(x_ref, w_ref, b_ref, o_ref, *, TQ, W, AH, AW, PHC):
    """One (batch, output-row-tile) step of the phase-split transposed conv.

    x_ref : (TH, W, Cin)       bf16  input row window incl. (AH-1)-row top halo
    w_ref : (AH, Cin, AW*PHC)  bf16  adapted weight, lanes ordered (bb, rh, rw, co)
    b_ref : (1, PHC)           f32   bias tiled over the (rh, rw) phases
    o_ref : (TQ, Wq, PHC)            uncropped output rows for this tile
    """
    Cin = x_ref.shape[-1]
    Wq = W + AW - 1

    # (1) Row-tap GEMMs: tap aa reads a shifted TQ-row view of the haloed tile
    #     (static ref slice on a leading dim -> free).  bf16 MXU inputs, f32
    #     accumulation; the sum over AH terms lives in registers/VMEM temps,
    #     there is no accumulator RMW.
    wide = None
    for aa in range(AH):
        lhs = x_ref[pl.ds(AH - 1 - aa, TQ)].reshape(TQ * W, Cin)
        part = jnp.dot(lhs, w_ref[aa], preferred_element_type=jnp.float32)
        wide = part if wide is None else wide + part
    wide = wide.reshape(TQ, W, AW * PHC)

    # (2) Width overlap-add, once per step, in registers: tap bb's lane block
    #     lands at width offset bb.  (AW == 1 for real htdemucs -> no-op.)
    if AW == 1:
        out = wide
    else:
        out = None
        for bb in range(AW):
            blk = wide[:, :, bb * PHC:(bb + 1) * PHC]
            parts = []
            if bb > 0:
                parts.append(jnp.zeros((TQ, bb, PHC), jnp.float32))
            parts.append(blk)
            if AW - 1 - bb > 0:
                parts.append(jnp.zeros((TQ, AW - 1 - bb, PHC), jnp.float32))
            shifted = jnp.concatenate(parts, axis=1) if len(parts) > 1 else blk
            out = shifted if out is None else out + shifted

    # (3) Bias folded into the single store; no separate accumulator pass.
    o_ref[...] = (out + b_ref[0]).astype(o_ref.dtype)


# ------------------------------ JAX wrapper -------------------------------- #

def lora_conv_transpose2d(x, W_frozen, bias, U, V, alpha, *, stride, padding,
                          output_padding, row_tile=None,
                          vmem_budget_bytes=20 << 20,
                          single_buffer_params=True):
    """y = conv_transpose2d(x, W_frozen + alpha*(U@V).view(W.shape), bias, ...)."""
    N, Cin, H, W = x.shape
    in_c, Cout, kH, kW = W_frozen.shape
    assert Cin == in_c
    sH, sW = stride
    pH, pW = padding
    opH, opW = output_padding
    if bias is None:
        bias = jnp.zeros((Cout,), jnp.float32)
    if opH > pH or opW > pW:
        # TODO(synk): would need bias-filled edge rows; not used by htdemucs.
        raise NotImplementedError("output_padding > padding not supported")

    AH = -(-kH // sH)                 # row taps per output phase
    AW = -(-kW // sW)                 # width taps per output phase
    kHp, kWp = AH * sH, AW * sW       # kernel zero-padded to a stride multiple
    Hq, Wq = H + AH - 1, W + AW - 1   # uncropped output rows/cols per phase
    Hout = (H - 1) * sH - 2 * pH + kH + opH
    Wout = (W - 1) * sW - 2 * pW + kW + opW
    PHC = sH * sW * Cout              # lanes per width tap: (rh, rw, co)
    LW = AW * PHC                     # lane width of the GEMM RHS / 'wide' value

    # --- adapted weight, computed ONCE per call (tiny, parameter-sized) -----
    # alpha stays a traced array -> changing it never triggers a recompile.
    W_adapted = W_frozen + alpha * jnp.dot(U, V).reshape(W_frozen.shape)
    Wp = jnp.pad(W_adapted, ((0, 0), (0, 0), (0, kHp - kH), (0, kWp - kW)))
    Wr = Wp.reshape(Cin, Cout, AH, sH, AW, sW)
    Wr = jnp.transpose(Wr, (2, 0, 4, 3, 5, 1)).reshape(AH, Cin, LW)
    Wr = Wr.astype(jnp.bfloat16)                         # bf16 MXU RHS
    bias_t = jnp.tile(bias.astype(jnp.float32), sH * sW).reshape(1, PHC)

    # --- spatial row tiling --------------------------------------------------
    if row_tile is None:
        per_row = (4 * Wq * PHC * 4) + (W * LW * 4) + (4 * W * Cin * 2)
        row_tile = max(1, int(vmem_budget_bytes // max(per_row, 1)))
    TQ = int(max(1, min(int(row_tile), Hq)))
    T = -(-Hq // TQ)
    Hq_t = T * TQ
    TH = TQ + AH - 1                  # input rows per tile incl. top halo

    # --- input: NCHW -> NHWC, zero halo pad, overlapping row windows, bf16 ---
    x_nhwc = jnp.transpose(x, (0, 2, 3, 1))                      # (N, H, W, Cin)
    xp = jnp.pad(x_nhwc, ((0, 0), (AH - 1, Hq_t - H), (0, 0), (0, 0)))
    ridx = (jnp.arange(T) * TQ)[:, None] + jnp.arange(TH)[None, :]
    xw = xp[:, ridx].astype(jnp.bfloat16)                        # (N, T, TH, W, Cin)

    # --- explicit VMEM budget for the compiler -------------------------------
    use_single_buf = bool(single_buffer_params and hasattr(pl, "Buffered"))
    x_tile_b = TH * W * Cin * 2
    w_b = AH * Cin * LW * 2
    out_tile_b = TQ * Wq * PHC * 4
    wide_b = TQ * W * LW * 4
    est = (2 * x_tile_b + (1 if use_single_buf else 2) * w_b + 2 * out_tile_b
           + wide_b + (AW + 1) * out_tile_b + 2 * x_tile_b)
    vmem_limit = int(min(56 << 20, max(32 << 20, 2 * est + (2 << 20))))

    const_kwargs = {}
    if use_single_buf:
        # Constant-index params: no point double-buffering them.
        const_kwargs["pipeline_mode"] = pl.Buffered(1)

    kern = functools.partial(_lora_convt_kernel,
                             TQ=TQ, W=W, AH=AH, AW=AW, PHC=PHC)

    out_u = pl.pallas_call(
        kern,
        out_shape=jax.ShapeDtypeStruct((N, Hq_t, Wq, PHC), x.dtype),
        grid=(N, T),
        in_specs=[
            pl.BlockSpec((None, None, TH, W, Cin), lambda n, t: (n, t, 0, 0, 0)),
            pl.BlockSpec((AH, Cin, LW), lambda n, t: (0, 0, 0), **const_kwargs),
            pl.BlockSpec((1, PHC), lambda n, t: (0, 0), **const_kwargs),
        ],
        out_specs=pl.BlockSpec((None, TQ, Wq, PHC), lambda n, t: (n, t, 0, 0)),
        compiler_params=_CompilerParams(
            dimension_semantics=("parallel", "parallel"),
            vmem_limit_bytes=vmem_limit),
    )(xw, Wr, bias_t)

    # Finalise: crop row padding, de-interleave phases, NHWC->NCHW, crop.
    z = out_u[:, :Hq]
    z = z.reshape(N, Hq, Wq, sH, sW, Cout)
    z = jnp.transpose(z, (0, 5, 1, 3, 2, 4)).reshape(N, Cout, Hq * sH, Wq * sW)
    return z[:, :, pH:pH + Hout, pW:pW + Wout]


# --------------------------------- main ------------------------------------ #

if __name__ == "__main__":
    # Shapes consistent with ConvTranspose2d(in=4, out=8, k=4, s=2, p=1) + LoRA.
    N, Cin, H, W = 2, 4, 16, 16
    Cout, kH, kW = 8, 4, 4
    stride, padding, output_padding = (2, 2), (1, 1), (0, 0)
    rank, alpha = 4, 1.0

    key = jax.random.PRNGKey(0)
    kx, kwgt, kb, ku, kv = jax.random.split(key, 5)

    x = jax.random.normal(kx, (N, Cin, H, W), jnp.float32)
    # ConvTranspose2d weight layout is [in_c, out_c, kH, kW]
    W_frozen = jax.random.normal(kwgt, (Cin, Cout, kH, kW), jnp.float32) * 0.1
    bias = jax.random.normal(kb, (Cout,), jnp.float32) * 0.1
    # LoRA params: U [fan_out=in_c, rank], V [rank, fan_in=out_c*kH*kW]
    fan_in = Cout * kH * kW
    scale = math.sqrt(1.0 / fan_in)
    U = jax.random.normal(ku, (Cin, rank), jnp.float32) * scale
    V = jax.random.normal(kv, (rank, fan_in), jnp.float32) * scale

    common = dict(stride=stride, padding=padding, output_padding=output_padding,
                  row_tile=8)   # small row tile to exercise the spatial grid axis
    fwd = jax.jit(functools.partial(lora_conv_transpose2d, **common))
    try:
        out = jax.block_until_ready(
            fwd(x, W_frozen, bias, U, V, jnp.float32(alpha)))
    except Exception:
        # Fallback for jax versions without BlockSpec pipeline_mode support.
        fwd = jax.jit(functools.partial(lora_conv_transpose2d,
                                        single_buffer_params=False, **common))
        out = jax.block_until_ready(
            fwd(x, W_frozen, bias, U, V, jnp.float32(alpha)))
    assert out.shape == (N, Cout, 32, 32), out.shape

    # Pure-JAX reference (lhs-dilated conv == conv_transpose, PyTorch semantics),
    # with the same bf16-cast inputs + f32 accumulation as the kernel.
    W_adapted_ref = W_frozen + alpha * (U @ V).reshape(W_frozen.shape)
    rhs = jnp.transpose(jnp.flip(W_adapted_ref, axis=(2, 3)), (1, 0, 2, 3))
    ref = lax.conv_general_dilated(
        x.astype(jnp.bfloat16), rhs.astype(jnp.bfloat16), window_strides=(1, 1),
        padding=[(kH - 1 - padding[0], kH - 1 - padding[0] + output_padding[0]),
                 (kW - 1 - padding[1], kW - 1 - padding[1] + output_padding[1])],
        lhs_dilation=stride, rhs_dilation=(1, 1),
        dimension_numbers=("NCHW", "OIHW", "NCHW"),
        preferred_element_type=jnp.float32,
    ) + bias[None, :, None, None]

    np.testing.assert_allclose(np.asarray(out), np.asarray(ref),
                               rtol=2e-3, atol=2e-3)
    print("KERNEL_OK")
</pallas_src>

<mosaic_0001>
module attributes {stable_mosaic.version = 11 : i64} {
  func.func @_lora_convt_kernel(%arg0: i32, %arg1: i32, %arg2: memref<1x1x9x16x4xbf16, #tpu.memory_space<vmem>>, %arg3: memref<2x4x64xbf16, #tpu.memory_space<vmem>>, %arg4: memref<1x32xf32, #tpu.memory_space<vmem>>, %arg5: memref<1x8x17x32xf32, #tpu.memory_space<vmem>>) attributes {dimension_semantics = [#tpu.dimension_semantics<parallel>, #tpu.dimension_semantics<parallel>], iteration_bounds = array<i64: 2, 3>, scalar_prefetch = 0 : i64, scratch_operands = 0 : i64, tpu.core_type = #tpu.core_type<tc>, window_params = [{transform_indices = @transform_0, window_bounds = array<i64: 1, 1, 9, 16, 4>}, {pipeline_mode = #tpu.pipeline_mode<synchronous>, transform_indices = @transform_1, window_bounds = array<i64: 2, 4, 64>}, {pipeline_mode = #tpu.pipeline_mode<synchronous>, transform_indices = @transform_2, window_bounds = array<i64: 1, 32>}, {transform_indices = @transform_3, window_bounds = array<i64: 1, 8, 17, 32>}]} {
    %c0 = arith.constant 0 : index
    %c0_0 = arith.constant 0 : index
    %c1 = arith.constant 1 : index
    %c0_1 = arith.constant 0 : index
    %c0_2 = arith.constant 0 : index
    %0 = vector.load %arg2[%c0, %c0_0, %c1, %c0_1, %c0_2] : memref<1x1x9x16x4xbf16, #tpu.memory_space<vmem>>, vector<1x1x8x16x4xbf16>
    %1 = vector.shape_cast %0 : vector<1x1x8x16x4xbf16> to vector<8x16x4xbf16>
    %2 = vector.shape_cast %1 : vector<8x16x4xbf16> to vector<128x4xbf16>
    %c0_3 = arith.constant 0 : index
    %c0_4 = arith.constant 0 : index
    %c0_5 = arith.constant 0 : index
    %3 = vector.load %arg3[%c0_3, %c0_4, %c0_5] : memref<2x4x64xbf16, #tpu.memory_space<vmem>>, vector<1x4x64xbf16>
    %4 = vector.shape_cast %3 : vector<1x4x64xbf16> to vector<4x64xbf16>
    %cst = arith.constant dense<0.000000e+00> : vector<128x64xf32>
    %5 = tpu.matmul %2, %4, %cst {dimension_numbers = #tpu.dot_dimension_numbers<[1], [0], [0], [1], [0, 0, 1, 1], [], []>} : vector<128x4xbf16>, vector<4x64xbf16>, vector<128x64xf32> -> vector<128x64xf32>
    %c0_6 = arith.constant 0 : index
    %c0_7 = arith.constant 0 : index
    %c0_8 = arith.constant 0 : index
    %c0_9 = arith.constant 0 : index
    %c0_10 = arith.constant 0 : index
    %6 = vector.load %arg2[%c0_6, %c0_7, %c0_8, %c0_9, %c0_10] : memref<1x1x9x16x4xbf16, #tpu.memory_space<vmem>>, vector<1x1x8x16x4xbf16>
    %7 = vector.shape_cast %6 : vector<1x1x8x16x4xbf16> to vector<8x16x4xbf16>
    %8 = vector.shape_cast %7 : vector<8x16x4xbf16> to vector<128x4xbf16>
    %c1_11 = arith.constant 1 : index
    %c0_12 = arith.constant 0 : index
    %c0_13 = arith.constant 0 : index
    %9 = vector.load %arg3[%c1_11, %c0_12, %c0_13] : memref<2x4x64xbf16, #tpu.memory_space<vmem>>, vector<1x4x64xbf16>
    %10 = vector.shape_cast %9 : vector<1x4x64xbf16> to vector<4x64xbf16>
    %cst_14 = arith.constant dense<0.000000e+00> : vector<128x64xf32>
    %11 = tpu.matmul %8, %10, %cst_14 {dimension_numbers = #tpu.dot_dimension_numbers<[1], [0], [0], [1], [0, 0, 1, 1], [], []>} : vector<128x4xbf16>, vector<4x64xbf16>, vector<128x64xf32> -> vector<128x64xf32>
    %12 = arith.addf %5, %11 : vector<128x64xf32>
    %13 = vector.shape_cast %12 : vector<128x64xf32> to vector<8x16x64xf32>
    %14 = vector.extract_strided_slice %13 {offsets = [0, 0, 0], sizes = [8, 16, 32], strides = [1, 1, 1]} : vector<8x16x64xf32> to vector<8x16x32xf32>
    %cst_15 = arith.constant 0.000000e+00 : f32
    %15 = vector.broadcast %cst_15 : f32 to vector<8x1x32xf32>
    %16 = tpu.concatenate %14, %15 in 1 : vector<8x16x32xf32>, vector<8x1x32xf32> -> vector<8x17x32xf32>
    %17 = vector.extract_strided_slice %13 {offsets = [0, 0, 32], sizes = [8, 16, 32], strides = [1, 1, 1]} : vector<8x16x64xf32> to vector<8x16x32xf32>
    %cst_16 = arith.constant 0.000000e+00 : f32
    %18 = vector.broadcast %cst_16 : f32 to vector<8x1x32xf32>
    %19 = tpu.concatenate %18, %17 in 1 : vector<8x1x32xf32>, vector<8x16x32xf32> -> vector<8x17x32xf32>
    %20 = arith.addf %16, %19 : vector<8x17x32xf32>
    %c0_17 = arith.constant 0 : index
    %c0_18 = arith.constant 0 : index
    %21 = vector.load %arg4[%c0_17, %c0_18] : memref<1x32xf32, #tpu.memory_space<vmem>>, vector<1x32xf32>
    %22 = vector.shape_cast %21 : vector<1x32xf32> to vector<32xf32>
    %23 = vector.shape_cast %22 : vector<32xf32> to vector<1x1x32xf32>
    %24 = vector.broadcast %23 : vector<1x1x32xf32> to vector<8x17x32xf32>
    %25 = arith.addf %20, %24 : vector<8x17x32xf32>
    %c0_19 = arith.constant 0 : index
    %c0_20 = arith.constant 0 : index
    %c0_21 = arith.constant 0 : index
    %c0_22 = arith.constant 0 : index
    %26 = vector.load %arg5[%c0_19, %c0_20, %c0_21, %c0_22] : memref<1x8x17x32xf32, #tpu.memory_space<vmem>>, vector<1x8x17x32xf32>
    %27 = vector.shape_cast %26 : vector<1x8x17x32xf32> to vector<8x17x32xf32>
    %28 = vector.shape_cast %25 : vector<8x17x32xf32> to vector<1x8x17x32xf32>
    tpu.vector_store %arg5[%c0_19, %c0_20, %c0_21, %c0_22], %28 {strides = array<i32>} : memref<1x8x17x32xf32, #tpu.memory_space<vmem>>, vector<1x8x17x32xf32>,
    return
  }
  func.func @transform_0(%arg0: i32, %arg1: i32) -> (i32, i32, i32, i32, i32) {
    %c0_i32 = arith.constant 0 : i32
    %c0_i32_0 = arith.constant 0 : i32
    %c0_i32_1 = arith.constant 0 : i32
    %c0_i32_2 = arith.constant 0 : i32
    return %arg0, %arg1, %c0_i32, %c0_i32_0, %c0_i32_1 : i32, i32, i32, i32, i32
  }
  func.func @transform_1(%arg0: i32, %arg1: i32) -> (i32, i32, i32) {
    %c0_i32 = arith.constant 0 : i32
    %c0_i32_0 = arith.constant 0 : i32
    %c0_i32_1 = arith.constant 0 : i32
    %c0_i32_2 = arith.constant 0 : i32
    return %c0_i32, %c0_i32_0, %c0_i32_1 : i32, i32, i32
  }
  func.func @transform_2(%arg0: i32, %arg1: i32) -> (i32, i32) {
    %c0_i32 = arith.constant 0 : i32
    %c0_i32_0 = arith.constant 0 : i32
    %c0_i32_1 = arith.constant 0 : i32
    return %c0_i32, %c0_i32_0 : i32, i32
  }
  func.func @transform_3(%arg0: i32, %arg1: i32) -> (i32, i32, i32, i32) {
    %c0_i32 = arith.constant 0 : i32
    %c0_i32_0 = arith.constant 0 : i32
    %c0_i32_1 = arith.constant 0 : i32
    return %arg0, %arg1, %c0_i32, %c0_i32_0 : i32, i32, i32, i32
  }
}

module attributes {stable_mosaic.version = 11 : i64} {
  func.func @_lora_convt_kernel(%arg0: i32, %arg1: i32, %arg2: memref<1x1x9x16x4xbf16, #tpu.memory_space<vmem>>, %arg3: memref<2x4x64xbf16, #tpu.memory_space<vmem>>, %arg4: memref<1x32xf32, #tpu.memory_space<vmem>>, %arg5: memref<1x8x17x32xf32, #tpu.memory_space<vmem>>) attributes {dimension_semantics = [#tpu.dimension_semantics<parallel>, #tpu.dimension_semantics<parallel>], iteration_bounds = array<i64: 2, 3>, scalar_prefetch = 0 : i64, scratch_operands = 0 : i64, tpu.core_type = #tpu.core_type<tc>, window_params = [{transform_indices = @transform_0, window_bounds = array<i64: 1, 1, 9, 16, 4>}, {pipeline_mode = #tpu.pipeline_mode<synchronous>, transform_indices = @transform_1, window_bounds = array<i64: 2, 4, 64>}, {pipeline_mode = #tpu.pipeline_mode<synchronous>, transform_indices = @transform_2, window_bounds = array<i64: 1, 32>}, {transform_indices = @transform_3, window_bounds = array<i64: 1, 8, 17, 32>}]} {
    %c0 = arith.constant 0 : index
    %c0_0 = arith.constant 0 : index
    %c1 = arith.constant 1 : index
    %c0_1 = arith.constant 0 : index
    %c0_2 = arith.constant 0 : index
    %0 = vector.load %arg2[%c0, %c0_0, %c1, %c0_1, %c0_2] : memref<1x1x9x16x4xbf16, #tpu.memory_space<vmem>>, vector<1x1x8x16x4xbf16>
    %1 = vector.shape_cast %0 : vector<1x1x8x16x4xbf16> to vector<8x16x4xbf16>
    %2 = vector.shape_cast %1 : vector<8x16x4xbf16> to vector<128x4xbf16>
    %c0_3 = arith.constant 0 : index
    %c0_4 = arith.constant 0 : index
    %c0_5 = arith.constant 0 : index
    %3 = vector.load %arg3[%c0_3, %c0_4, %c0_5] : memref<2x4x64xbf16, #tpu.memory_space<vmem>>, vector<1x4x64xbf16>
    %4 = vector.shape_cast %3 : vector<1x4x64xbf16> to vector<4x64xbf16>
    %cst = arith.constant dense<0.000000e+00> : vector<128x64xf32>
    %5 = tpu.matmul %2, %4, %cst {dimension_numbers = #tpu.dot_dimension_numbers<[1], [0], [0], [1], [0, 0, 1, 1], [], []>} : vector<128x4xbf16>, vector<4x64xbf16>, vector<128x64xf32> -> vector<128x64xf32>
    %c0_6 = arith.constant 0 : index
    %c0_7 = arith.constant 0 : index
    %c0_8 = arith.constant 0 : index
    %c0_9 = arith.constant 0 : index
    %c0_10 = arith.constant 0 : index
    %6 = vector.load %arg2[%c0_6, %c0_7, %c0_8, %c0_9, %c0_10] : memref<1x1x9x16x4xbf16, #tpu.memory_space<vmem>>, vector<1x1x8x16x4xbf16>
    %7 = vector.shape_cast %6 : vector<1x1x8x16x4xbf16> to vector<8x16x4xbf16>
    %8 = vector.shape_cast %7 : vector<8x16x4xbf16> to vector<128x4xbf16>
    %c1_11 = arith.constant 1 : index
    %c0_12 = arith.constant 0 : index
    %c0_13 = arith.constant 0 : index
    %9 = vector.load %arg3[%c1_11, %c0_12, %c0_13] : memref<2x4x64xbf16, #tpu.memory_space<vmem>>, vector<1x4x64xbf16>
    %10 = vector.shape_cast %9 : vector<1x4x64xbf16> to vector<4x64xbf16>
    %cst_14 = arith.constant dense<0.000000e+00> : vector<128x64xf32>
    %11 = tpu.matmul %8, %10, %cst_14 {dimension_numbers = #tpu.dot_dimension_numbers<[1], [0], [0], [1], [0, 0, 1, 1], [], []>} : vector<128x4xbf16>, vector<4x64xbf16>, vector<128x64xf32> -> vector<128x64xf32>
    %12 = arith.addf %5, %11 : vector<128x64xf32>
    %13 = vector.shape_cast %12 : vector<128x64xf32> to vector<8x16x64xf32>
    %14 = vector.extract_strided_slice %13 {offsets = [0, 0, 0], sizes = [8, 16, 32], strides = [1, 1, 1]} : vector<8x16x64xf32> to vector<8x16x32xf32>
    %cst_15 = arith.constant 0.000000e+00 : f32
    %15 = vector.broadcast %cst_15 : f32 to vector<8x1x32xf32>
    %16 = tpu.concatenate %14, %15 in 1 : vector<8x16x32xf32>, vector<8x1x32xf32> -> vector<8x17x32xf32>
    %17 = vector.extract_strided_slice %13 {offsets = [0, 0, 32], sizes = [8, 16, 32], strides = [1, 1, 1]} : vector<8x16x64xf32> to vector<8x16x32xf32>
    %cst_16 = arith.constant 0.000000e+00 : f32
    %18 = vector.broadcast %cst_16 : f32 to vector<8x1x32xf32>
    %19 = tpu.concatenate %18, %17 in 1 : vector<8x1x32xf32>, vector<8x16x32xf32> -> vector<8x17x32xf32>
    %20 = arith.addf %16, %19 : vector<8x17x32xf32>
    %c0_17 = arith.constant 0 : index
    %c0_18 = arith.constant 0 : index
    %21 = vector.load %arg4[%c0_17, %c0_18] : memref<1x32xf32, #tpu.memory_space<vmem>>, vector<1x32xf32>
    %22 = vector.shape_cast %21 : vector<1x32xf32> to vector<32xf32>
    %23 = vector.shape_cast %22 : vector<32xf32> to vector<1x1x32xf32>
    %24 = vector.broadcast %23 : vector<1x1x32xf32> to vector<8x17x32xf32>
    %25 = arith.addf %20, %24 : vector<8x17x32xf32>
    %c0_19 = arith.constant 0 : index
    %c0_20 = arith.constant 0 : index
    %c0_21 = arith.constant 0 : index
    %c0_22 = arith.constant 0 : index
    %26 = vector.load %arg5[%c0_19, %c0_20, %c0_21, %c0_22] : memref<1x8x17x32xf32, #tpu.memory_space<vmem>>, vector<1x8x17x32xf32>
    %27 = vector.shape_cast %26 : vector<1x8x17x32xf32> to vector<8x17x32xf32>
    %28 = vector.shape_cast %25 : vector<8x17x32xf32> to vector<1x8x17x32xf32>
    tpu.vector_store %arg5[%c0_19, %c0_20, %c0_21, %c0_22], %28 {strides = array<i32>} : memref<1x8x17x32xf32, #tpu.memory_space<vmem>>, vector<1x8x17x32xf32>,
    return
  }
  func.func @transform_0(%arg0: i32, %arg1: i32) -> (i32, i32, i32, i32, i32) {
    %c0_i32 = arith.constant 0 : i32
    %c0_i32_0 = arith.constant 0 : i32
    %c0_i32_1 = arith.constant 0 : i32
    %c0_i32_2 = arith.constant 0 : i32
    return %arg0, %arg1, %c0_i32, %c0_i32_0, %c0_i32_1 : i32, i32, i32, i32, i32
  }
  func.func @transform_1(%arg0: i32, %arg1: i32) -> (i32, i32, i32) {
    %c0_i32 = arith.constant 0 : i32
    %c0_i32_0 = arith.constant 0 : i32
    %c0_i32_1 = arith.constant 0 : i32
    %c0_i32_2 = arith.constant 0 : i32
    return %c0_i32, %c0_i32_0, %c0_i32_1 : i32, i32, i32
  }
  func.func @transform_2(%arg0: i32, %arg1: i32) -> (i32, i32) {
    %c0_i32 = arith.constant 0 : i32
    %c0_i32_0 = arith.constant 0 : i32
    %c0_i32_1 = arith.constant 0 : i32
    return %c0_i32, %c0_i32_0 : i32, i32
  }
  func.func @transform_3(%arg0: i32, %arg1: i32) -> (i32, i32, i32, i32) {
    %c0_i32 = arith.constant 0 : i32
    %c0_i32_0 = arith.constant 0 : i32
    %c0_i32_1 = arith.constant 0 : i32
    return %arg0, %arg1, %c0_i32, %c0_i32_0 : i32, i32, i32, i32
  }
}

</mosaic_0001>

<bundles_post_ra>
// kernel: tile.8
= control target key start
LH: loop header
LB: loop body
LE: loop exit
PB: predicated region body
PF: predicated region fallthrough
CT: control target
= control target key end

     0   :  { %2 = vsyncpa [#allocation1], 0  ;;  %s44_s6 = smov [#allocation0]   ;;  %s70_s0 = inlined_call_operand.hbm [shape: f32[8], index: 0, kind: input, shape index: {}]   ;;  %s71_s1 = inlined_call_operand.vmem [shape: f32[4,8], index: 1, kind: output, shape index: {}]  }
   0x1   :  { %s9_s7 = sshll.u32 %s44_s6, 4  ;;  %s20_s10 = scalar_lea.hbm %s70_s0, 16  ;;  %s10_s7 = int_to_ptr.vmem [resolvable:$true] %s9_s7 }
   0x2   :  { %p21_p0 = scmp.ne.s32.totalorder %s70_s0, %s20_s10  ;;  %p24_p1 = scmp.lt.u32.totalorder %s20_s10, %s70_s0 }
   0x4   :  { %p26_p2 = pnand %p24_p1, %p21_p0 }
   0x6   :  { %29 = shalt.err (!%p26_p2)
}
   0x7   :  { %s30_s15 = scalar_lea.vmem %s10_s7, 16  ;;  %s34_s16 = scalar_lea.vmem %s10_s7, 32 }
   0x8   :  { %p31_p3 = scmp.ne.s32.totalorder %s10_s7, %s30_s15  ;;  %p35_p4 = scmp.lt.s32.totalorder %s10_s7, %s10_s7 }
   0x9   :  { %p36_p5 = scmp.lt.s32.totalorder %s34_s16, %s30_s15 }
   0xb   :  { %p37_p6 = por %p36_p5, %p35_p4 }
   0xd   :  { %p38_p7 = pnand %p37_p6, %p31_p3 }
   0xf   :  { %41 = shalt.err (!%p38_p7)
}
  0x10   :  { %12 = dma.hbm_to_vmem [thread:$0]  %s70_s0, 16, %s10_s7, [#allocation1]  }
  0x11   :  { %42 = dma.done.wait [#allocation1], 16  }
  0x12   :  { %43 = vsyncadd [#allocation1], 4294967280  ;;  %v16_v0 = vld [vmem:[#allocation0] ss:$0 sm:$0xff] }
  0x13   :  { %17 = vst [vmem:[%s71_s1] sm:$0xf] %v16_v0 }
  0x14   :  { %18 = vsyncpa [#allocation1], 1 }

// kernel: tile.9
= control target key start
LH: loop header
LB: loop body
LE: loop exit
PB: predicated region body
PF: predicated region fallthrough
CT: control target
= control target key end

     0   :  { %vm7_vm0 = vcmask 64512   ;;  %s37_s8 = smov 8   ;;  %s38_s9 = smov 16   ;;  %vm13_vm1 = vcmask 261312   ;;  %vm19_vm2 = vcmask 195712   ;;  %vm25_vm3 = vcmask 130112   ;;  %s55_s0 = inlined_call_operand.vmem [shape: f32[4,8], index: 0, kind: input, shape index: {}]   ;;  %s56_s1 = inlined_call_operand.vmem [shape: f32[1,32], index: 1, kind: output, shape index: {}]  }
   0x1   :  { %v4_v0 = vld [vmem:[%s55_s0] sm:$0xf]  ;;  %s36_s0 = smov 24  }
   0x2   :  { %5 = vst [vmem:[#allocation1] sm:$0xf] %v4_v0 }
   0x9   :  { %v10_v1 = vld [vmem:[#allocation1 + $0x3] sm:$0x1]   ;;  %v22_v2 = vld [vmem:[#allocation1 + $0x1] sm:$0x1]   ;;  %v6_v3 = vld [vmem:[#allocation1] sm:$0x1]  }
   0xa   :  { %11 = vrot.lane.b32.xlu0 %v10_v1, %s36_s0  ;;  %23 = vrot.lane.b32.xlu1 %v22_v2, %s37_s8  ;;  %v16_v4 = vld [vmem:[#allocation1 + $0x2] sm:$0x1]   ;;  %8 = vst.msk [vmem:[#allocation0] sm:$0x1] %vm7_vm0, %v6_v3  }
   0xe   :  { %17 = vrot.lane.b32.xlu0 %v16_v4, %s38_s9 }
  0x7c   :  { %v12_v5 = vpop.permute.xlu0 %11   ;;  %v24_v6 = vpop.permute.xlu1 %23  }
  0x7d   :  { %14 = vst.msk [vmem:[#allocation0] sm:$0x1] %vm13_vm1, %v12_v5  }
  0x80   :  { %v18_v7 = vpop.permute.xlu0 %17  }
  0x81   :  { %20 = vst.msk [vmem:[#allocation0] sm:$0x1] %vm19_vm2, %v18_v7  }
  0x82   :  { %26 = vst.msk [vmem:[#allocation0] sm:$0x1] %vm25_vm3, %v24_v6  }
  0x89   :  { %v30_v8 = vld [vmem:[#allocation0] sm:$0x1] }
  0x8a   :  { %32 = vst [vmem:[%s56_s1] sm:$0x1] %v30_v8 }

// kernel: lora_conv_transpose2d.1
= control target key start
LH: loop header
LB: loop body
LE: loop exit
PB: predicated region body
PF: predicated region fallthrough
CT: control target
= control target key end

     0   :  { %s1132_s12 = smov 0   ;;  %s1134_s13 = smov 0   ;;  %s1415_s0 = inlined_call_operand.vmem [shape: bf16[2,3,9,16,4], index: 0, kind: input, shape index: {}]   ;;  %s1416_s1 = inlined_call_operand.vmem [shape: bf16[2,4,64], index: 1, kind: input, shape index: {}]   ;;  %s1417_s2 = inlined_call_operand.vmem [shape: f32[1,32], index: 2, kind: input, shape index: {}]   ;;  %s1418_s3 = inlined_call_operand.vmem [shape: f32[2,24,17,32], index: 3, kind: output, shape index: {}]  }
   0x1   :  { %s1136_s14 = smov 0   ;;  %s1138_s15 = smov 0  }
   0x2   :  { %s1140_s16 = smov 0  }
   0x3 LB: > { %s22_s17 = sadd.s32 1, %s1101_s14  ;;  %s25_s18 = sadd.s32 1, %s1105_s15  ;;  %s1109_s16 = sphi %s1140_s16, %s13_s16   ;;  %s1105_s15 = sphi %s1138_s15, %s1422_s15   ;;  %s1101_s14 = sphi %s1136_s14, %s1421_s14   ;;  %s1097_s13 = sphi %s1134_s13, %s1420_s13   ;;  %s1093_s12 = sphi %s1132_s12, %s1419_s12  }
   0x4   : > { %p23_p0 = scmp.ge.s32.totalorder %s22_s17, 3  ;;  %p882_p1 = scmp.ge.s32.totalorder %s1109_s16, 1 }
   0x5   : > { %p157_p2 = scmp.lt.s32.totalorder %s1109_s16, 7 }
   0x6   : > { %s1424_s17 = smov (%p23_p0, %s22_s17), 0  ;;  %s1426_s18 = smov (!%p23_p0, %s25_s18), %s1105_s15 }
   0x7   : > { %p158_p3 = pnand %p882_p1, %p157_p2  ;;  %p27_p4 = scmp.ge.s32.totalorder %s1426_s18, 2 }
   0x8   : > { %v902_v0 = vld [vmem:[%s1416_s1 + $0x2] sm:$0x3] (!%p158_p3)  ;;  %vm312_vm0 = vcmask (!%p158_p3), 1041408   ;;  %v228_v1 = vld [vmem:[%s1416_s1] sm:$0x3] (!%p158_p3)  ;;  %p190_p5 = scmp.lt.s32.totalorder (!%p158_p3), %s1097_s13, 1 }
   0x9   : > { %s1428_s18 = smov (%p27_p4, %s1426_s18), 0  ;;  %161 = sbr.rel (%p158_p3) target bundleno = 406 (0x196), region = 32 }
   0xa   : > { %1008 = vmatprep.subr.msk.bf16.mxu1 (!%p158_p3), %vm312_vm0, %v902_v0  ;;  %1009 = vmatprep.subr.msk.bf16.mxu0 (!%p158_p3), %vm312_vm0, %v228_v1  ;;  %v314_v2 = vsel (!%p158_p3), %vm312_vm0, %v902_v0, 0  ;;  %v478_v3 = vsel (!%p158_p3), %vm312_vm0, %v228_v1, 0  ;;  %p192_p6 = scmp.lt.s32.totalorder (!%p158_p3), %s1093_s12, 2  ;;  %vm287_vm1 = vcmask (!%p158_p3), 31744   ;;  %s1111_s4 = smov (!%p158_p3), 96   ;;  %vm593_vm2 = vcmask (!%p158_p3), 1040384  }
   0xb   : > { %957 = vmatpush3.bf16.msra.mxu1 (!%p158_p3), %v314_v2  ;;  %975 = vmatpush3.bf16.msra.mxu0 (!%p158_p3), %v478_v3  ;;  %s884_s5 = sshll.u32 (!%p158_p3), %s1093_s12, 3  ;;  %vm756_vm3 = vcmask (!%p158_p3), 253952   ;;  %vm753_vm4 = vcmask (!%p158_p3), 261120  }
   0xc   : > { %p202_p7 = scmp.lt.s32.totalorder (!%p158_p3), %s884_s5, 23 }
  0x10   : > { %s1430_s13 = smov (!%p190_p5, %s1097_s13), 1  ;;  %s1432_s5 = smov (!%p202_p7, %s884_s5), 23 }
  0x11   : > { %s193_s23 = scalar_select %p192_p6, %s1093_s12, 2 }
  0x12   : > { %s1011_s24 = smul.u32 54, %s1430_s13 }
  0x13   : > { %s1010_s25 = smul.u32 18, %s193_s23 }
  0x14   : > { %s1013_s6 = smul.u32 72, %s1430_s13 }
  0x15   : > { %s196_s26 = sadd.s32 %s1011_s24, %s1010_s25  ;;  %s1012_s7 = smul.u32 3, %s1432_s5 }
  0x16   : > { %s883_s27 = sshll.u32 %s196_s26, 2 }
  0x17   : > { %s1178_s30 = scalar_lea.vmem %s1415_s0, %s883_s27  ;;  %s206_s8 = sadd.s32 %s1013_s6, %s1012_s7 }
  0x18   : > { %v1055_v4 = vld [vmem:[%s1178_s30] sm:$0xff]   ;;  %v1056_v5 = vld [vmem:[%s1178_s30 + $0x8] sm:$0xff]   ;;  %v1058_v7 = vld [vmem:[%s1178_s30 + $0x10] sm:$0xff]   ;;  %s885_s9 = sshll.u32 %s206_s8, 3 }
  0x19   : > { %958 = vmatprep.mubr.msk.bf16.mxu1 %vm287_vm1, %v1055_v4  ;;  %v1057_v6 = vld [vmem:[%s1178_s30 + $0x8] sm:$0xff]   ;;  %976 = vmatprep.mubr.msk.bf16.mxu0 %vm287_vm1, %v1056_v5  ;;  %v1059_v8 = vld [vmem:[%s1178_s30 + $0x10] sm:$0xff]   ;;  %v1060_v9 = vld [vmem:[%s1178_s30 + $0x18] sm:$0xff]   ;;  %s1303_s21 = scalar_lea.vmem %s1418_s3, %s885_s9 }
  0x1a   : > { %959 = vmatmul.mubr.msk.bf16.vlgmr.msra.gmra.mrb[0].mxu1 %vm287_vm1, %v1057_v6  ;;  %977 = vmatmul.mubr.msk.bf16.vlgmr.msra.gmra.mrb[0].mxu0 %vm287_vm1, %v1058_v7  ;;  %v1061_v10 = vld [vmem:[%s1178_s30 + $0x18] sm:$0xff]   ;;  %v1062_v11 = vld [vmem:[%s1178_s30 + $0x20] sm:$0xff]   ;;  %v1064_v13 = vld [vmem:[%s1178_s30 + $0x28] sm:$0xff]  }
  0x1b   : > { %962 = vmatprep.mubr.msk.bf16.mxu1 %vm287_vm1, %v1059_v8  ;;  %980 = vmatprep.mubr.msk.bf16.mxu0 %vm287_vm1, %v1060_v9  ;;  %v1063_v12 = vld [vmem:[%s1178_s30 + $0x20] sm:$0xff]   ;;  %v1065_v14 = vld [vmem:[%s1178_s30 + $0x28] sm:$0xff]   ;;  %v1066_v15 = vld [vmem:[%s1178_s30 + $0x30] sm:$0xff]  }
  0x1c   : > { %v1067_v16 = vld [vmem:[%s1178_s30 + $0x30] sm:$0xff]   ;;  %v1068_v17 = vld [vmem:[%s1178_s30 + $0x38] sm:$0xff]   ;;  %v1070_v19 = vld [vmem:[%s1178_s30 + $0x40] sm:$0xff]  }
  0x1d   : > { %v1069_v18 = vld [vmem:[%s1178_s30 + $0x38] sm:$0xff]  }
  0x22   : > { %963 = vmatmul.mubr.msk.bf16.gmra.mrb[4].mxu1 %vm287_vm1, %v1061_v10  ;;  %981 = vmatmul.mubr.msk.bf16.gmra.mrb[4].mxu0 %vm287_vm1, %v1062_v11 }
  0x23   : > { %966 = vmatprep.mubr.msk.bf16.mxu1 %vm287_vm1, %v1063_v12  ;;  %984 = vmatprep.mubr.msk.bf16.mxu0 %vm287_vm1, %v1064_v13 }
  0x2a   : > { %967 = vmatmul.mubr.msk.bf16.gmra.mrb[8].mxu1 %vm287_vm1, %v1065_v14  ;;  %985 = vmatmul.mubr.msk.bf16.gmra.mrb[8].mxu0 %vm287_vm1, %v1066_v15 }
  0x2b   : > { %970 = vmatprep.mubr.msk.bf16.mxu1 %vm287_vm1, %v1067_v16  ;;  %988 = vmatprep.mubr.msk.bf16.mxu0 %vm287_vm1, %v1068_v17 }
  0x32   : > { %971 = vmatmul.mubr.msk.bf16.gmra.mrb[12].mxu1 %vm287_vm1, %v1069_v18  ;;  %989 = vmatmul.mubr.msk.bf16.gmra.mrb[12].mxu0 %vm287_vm1, %v1070_v19 }
  0xed   : > { %v960_v20 = vpop.f32.mrb[0].mxu1  ;;  %v978_v21 = vpop.f32.mrb[0].mxu0 }
  0xee   : > { %v350_v22 = vpop.f32.mrb[1].mxu1  ;;  %v1212_v23 = vadd.f32 %v978_v21, %v960_v20  ;;  %v514_v24 = vpop.f32.mrb[1].mxu0 }
  0xef   : > { %v961_v25 = vpop.f32.mrb[2].mxu1  ;;  %v1214_v26 = vadd.f32 %v514_v24, %v350_v22  ;;  %v979_v27 = vpop.f32.mrb[2].mxu0 }
  0xf0   : > { %v353_v28 = vpop.f32.mrb[3].mxu1  ;;  %v1216_v29 = vadd.f32 %v979_v27, %v961_v25  ;;  %v517_v30 = vpop.f32.mrb[3].mxu0  ;;  %v597_v31 = vrot.slane %v1212_v23, 7 }
  0xf1   : > { %v1219_v32 = vadd.f32 %v517_v30, %v353_v28  ;;  %v594_v34 = vrot.slane %v1214_v26, 7 }
  0xf2   : > { %624 = vrot.lane.b32.xlu0 %v597_v31, %s1111_s4  ;;  %v598_v33 = vrot.slane %v1216_v29, 7 }
  0xf3   : > { %v595_v45 = vrot.slane %v1219_v32, 7 }
  0xf4   : > { %628 = vrot.lane.b32.xlu1 %v598_v33, %s1111_s4  ;;  %v599_v44 = vsel %vm593_vm2, %v597_v31, %v598_v33  ;;  %v1297_v31 = vld [vmem:[%s1417_s2] ss:$0 sm:$0xff] }
  0xf5   : > { %v964_v35 = vpop.f32.mrb[4].mxu1  ;;  %v982_v36 = vpop.f32.mrb[4].mxu0  ;;  %v596_v51 = vsel %vm593_vm2, %v594_v34, %v595_v45 }
  0xf6   : > { %v366_v37 = vpop.f32.mrb[5].mxu1  ;;  %v1225_v38 = vadd.f32 %v982_v36, %v964_v35  ;;  %v530_v39 = vpop.f32.mrb[5].mxu0  ;;  %618 = vrot.lane.b32.xlu0 %v594_v34, %s1111_s4 }
  0xf7   : > { %v965_v40 = vpop.f32.mrb[6].mxu1  ;;  %v1228_v41 = vadd.f32 %v530_v39, %v366_v37  ;;  %v983_v42 = vpop.f32.mrb[6].mxu0 }
  0xf8   : > { %v369_v43 = vpop.f32.mrb[7].mxu1  ;;  %v603_v46 = vrot.slane %v1225_v38, 7  ;;  %v1233_v47 = vadd.f32 %v983_v42, %v965_v40  ;;  %626 = vrot.lane.b32.xlu1 %v599_v44, %s1111_s4  ;;  %v533_v48 = vpop.f32.mrb[7].mxu0 }
  0xf9   : > { %v1236_v49 = vadd.f32 %v533_v48, %v369_v43  ;;  %v600_v54 = vrot.slane %v1228_v41, 7 }
  0xfa   : > { %622 = vrot.lane.b32.xlu0 %v595_v45, %s1111_s4  ;;  %v604_v1 = vrot.slane %v1233_v47, 7 }
  0xfb   : > { %v601_v61 = vrot.slane %v1236_v49, 7 }
  0xfc   : > { %636 = vrot.lane.b32.xlu1 %v603_v46, %s1111_s4  ;;  %v605_v10 = vsel %vm593_vm2, %v603_v46, %v604_v1 }
  0xfd   : > { %v968_v50 = vpop.f32.mrb[8].mxu1  ;;  %v986_v52 = vpop.f32.mrb[8].mxu0  ;;  %v602_v3 = vsel %vm593_vm2, %v600_v54, %v601_v61 }
  0xfe   : > { %v382_v53 = vpop.f32.mrb[9].mxu1  ;;  %620 = vrot.lane.b32.xlu0 %v596_v51, %s1111_s4  ;;  %v1243_v55 = vadd.f32 %v986_v52, %v968_v50  ;;  %v546_v56 = vpop.f32.mrb[9].mxu0 }
  0xff   : > { %v969_v57 = vpop.f32.mrb[10].mxu1  ;;  %v1245_v58 = vadd.f32 %v546_v56, %v382_v53  ;;  %v987_v59 = vpop.f32.mrb[10].mxu0 }
 0x100   : > { %v385_v60 = vpop.f32.mrb[11].mxu1  ;;  %630 = vrot.lane.b32.xlu1 %v600_v54, %s1111_s4  ;;  %v1249_v62 = vadd.f32 %v987_v59, %v969_v57  ;;  %v549_v63 = vpop.f32.mrb[11].mxu0  ;;  %v609_v14 = vrot.slane %v1243_v55, 7 }
 0x101   : > { %v1251_v0 = vadd.f32 %v549_v63, %v385_v60  ;;  %v606_v6 = vrot.slane %v1245_v58, 7 }
 0x102   : > { %634 = vrot.lane.b32.xlu0 %v601_v61, %s1111_s4  ;;  %v610_v19 = vrot.slane %v1249_v62, 7 }
 0x103   : > { %v607_v18 = vrot.slane %v1251_v0, 7 }
 0x104   : > { %640 = vrot.lane.b32.xlu1 %v604_v1, %s1111_s4  ;;  %v611_v22 = vsel %vm593_vm2, %v609_v14, %v610_v19 }
 0x105   : > { %v972_v2 = vpop.f32.mrb[12].mxu1  ;;  %v990_v4 = vpop.f32.mrb[12].mxu0  ;;  %v608_v20 = vsel %vm593_vm2, %v606_v6, %v607_v18 }
 0x106   : > { %v398_v5 = vpop.f32.mrb[13].mxu1  ;;  %632 = vrot.lane.b32.xlu0 %v602_v3, %s1111_s4  ;;  %v1259_v7 = vadd.f32 %v990_v4, %v972_v2  ;;  %v562_v8 = vpop.f32.mrb[13].mxu0 }
 0x107   : > { %v973_v9 = vpop.f32.mrb[14].mxu1  ;;  %v1262_v11 = vadd.f32 %v562_v8, %v398_v5  ;;  %v991_v12 = vpop.f32.mrb[14].mxu0 }
 0x108   : > { %v401_v13 = vpop.f32.mrb[15].mxu1  ;;  %638 = vrot.lane.b32.xlu1 %v605_v10, %s1111_s4  ;;  %v1266_v15 = vadd.f32 %v991_v12, %v973_v9  ;;  %v565_v16 = vpop.f32.mrb[15].mxu0  ;;  %v615_v24 = vrot.slane %v1259_v7, 7 }
 0x109   : > { %v1268_v17 = vadd.f32 %v565_v16, %v401_v13  ;;  %v612_v21 = vrot.slane %v1262_v11, 7 }
 0x10a   : > { %642 = vrot.lane.b32.xlu0 %v606_v6, %s1111_s4  ;;  %v616_v27 = vrot.slane %v1266_v15, 7 }
 0x10b   : > { %v613_v25 = vrot.slane %v1268_v17, 7 }
 0x10c   : > { %648 = vrot.lane.b32.xlu1 %v609_v14, %s1111_s4  ;;  %v617_v30 = vsel %vm593_vm2, %v615_v24, %v616_v27 }
 0x10d   : > { %v614_v28 = vsel %vm593_vm2, %v612_v21, %v613_v25 }
 0x10e   : > { %646 = vrot.lane.b32.xlu0 %v607_v18, %s1111_s4 }
 0x110   : > { %652 = vrot.lane.b32.xlu1 %v610_v19, %s1111_s4 }
 0x112   : > { %644 = vrot.lane.b32.xlu0 %v608_v20, %s1111_s4 }
 0x114   : > { %650 = vrot.lane.b32.xlu1 %v611_v22, %s1111_s4 }
 0x116   : > { %654 = vrot.lane.b32.xlu0 %v612_v21, %s1111_s4 }
 0x118   : > { %660 = vrot.lane.b32.xlu1 %v615_v24, %s1111_s4 }
 0x11a   : > { %656 = vrot.lane.b32.xlu0 %v614_v28, %s1111_s4 }
 0x11c   : > { %662 = vrot.lane.b32.xlu1 %v617_v30, %s1111_s4 }
 0x11e   : > { %658 = vrot.lane.b32.xlu0 %v613_v25, %s1111_s4 }
 0x120   : > { %664 = vrot.lane.b32.xlu1 %v616_v27, %s1111_s4 }
 0x164   : > { %v625_v33 = vpop.permute.xlu0 %624 }
 0x165   : > { %v691_v34 = vsel %vm593_vm2, 0.0, %v625_v33 }
 0x166   : > { %v701_v35 = vadd.f32 %v691_v34, %v1212_v23  ;;  %v629_v36 = vpop.permute.xlu1 %628 }
 0x167   : > { %v734_v37 = vadd.f32 %v1297_v31, %v629_v36 }
 0x168   : > { %v732_v39 = vadd.f32 %v1297_v31, %v701_v35  ;;  %v619_v40 = vpop.permute.xlu0 %618 }
 0x169   : > { %760 = vst.msk [vmem:[%s1303_s21 + $0x28] sm:$0x1] %vm756_vm3, %v734_v37  ;;  %v690_v42 = vsel %vm593_vm2, 0.0, %v619_v40 }
 0x16a   : > { %758 = vst.msk [vmem:[%s1303_s21 + $0x18] sm:$0xff] %vm753_vm4, %v732_v39  ;;  %v698_v43 = vadd.f32 %v690_v42, %v1214_v26  ;;  %v627_v23 = vpop.permute.xlu1 %626 }
 0x16b   : > { %v702_v44 = vadd.f32 %v627_v23, %v1216_v29 }
 0x16c   : > { %v729_v45 = vadd.f32 %v1297_v31, %v698_v43  ;;  %v623_v46 = vpop.permute.xlu0 %622 }
 0x16d   : > { %v733_v48 = vadd.f32 %v1297_v31, %v702_v44  ;;  %v731_v50 = vadd.f32 %v1297_v31, %v623_v46 }
 0x16e   : > { %754 = vst.msk [vmem:[%s1303_s21] sm:$0xff] %vm753_vm4, %v729_v45  ;;  %v637_v51 = vpop.permute.xlu1 %636 }
 0x16f   : > { %759 = vst.msk [vmem:[%s1303_s21 + $0x20] sm:$0xff] %vm753_vm4, %v733_v48  ;;  %v693_v26 = vsel %vm593_vm2, 0.0, %v637_v51 }
 0x170   : > { %757 = vst.msk [vmem:[%s1303_s21 + $0x10] sm:$0x1] %vm756_vm3, %v731_v50  ;;  %v707_v29 = vadd.f32 %v693_v26, %v1225_v38  ;;  %v621_v52 = vpop.permute.xlu0 %620 }
 0x171   : > { %v699_v53 = vadd.f32 %v621_v52, %v1219_v32 }
 0x172   : > { %v738_v54 = vadd.f32 %v1297_v31, %v707_v29  ;;  %v631_v56 = vpop.permute.xlu1 %630 }
 0x173   : > { %v730_v57 = vadd.f32 %v1297_v31, %v699_v53  ;;  %v692_v59 = vsel %vm593_vm2, 0.0, %v631_v56 }
 0x174   : > { %764 = vst.msk [vmem:[%s1303_s21 + $0x48] sm:$0xff] %vm753_vm4, %v738_v54  ;;  %v704_v60 = vadd.f32 %v692_v59, %v1228_v41  ;;  %v635_v61 = vpop.permute.xlu0 %634 }
 0x175   : > { %755 = vst.msk [vmem:[%s1303_s21 + $0x8] sm:$0xff] %vm753_vm4, %v730_v57  ;;  %v737_v38 = vadd.f32 %v1297_v31, %v635_v61 }
 0x176   : > { %v735_v32 = vadd.f32 %v1297_v31, %v704_v60  ;;  %v641_v63 = vpop.permute.xlu1 %640 }
 0x177   : > { %763 = vst.msk [vmem:[%s1303_s21 + $0x40] sm:$0x1] %vm756_vm3, %v737_v38  ;;  %v740_v1 = vadd.f32 %v1297_v31, %v641_v63 }
 0x178   : > { %761 = vst.msk [vmem:[%s1303_s21 + $0x30] sm:$0xff] %vm753_vm4, %v735_v32  ;;  %v633_v2 = vpop.permute.xlu0 %632 }
 0x179   : > { %766 = vst.msk [vmem:[%s1303_s21 + $0x58] sm:$0x1] %vm756_vm3, %v740_v1  ;;  %v705_v41 = vadd.f32 %v633_v2, %v1236_v49 }
 0x17a   : > { %v639_v3 = vpop.permute.xlu1 %638 }
 0x17b   : > { %v736_v4 = vadd.f32 %v1297_v31, %v705_v41  ;;  %v708_v5 = vadd.f32 %v639_v3, %v1233_v47 }
 0x17c   : > { %v643_v6 = vpop.permute.xlu0 %642 }
 0x17d   : > { %762 = vst.msk [vmem:[%s1303_s21 + $0x38] sm:$0xff] %vm753_vm4, %v736_v4  ;;  %v739_v8 = vadd.f32 %v1297_v31, %v708_v5  ;;  %v694_v9 = vsel %vm593_vm2, 0.0, %v643_v6 }
 0x17e   : > { %v710_v10 = vadd.f32 %v694_v9, %v1245_v58  ;;  %v649_v12 = vpop.permute.xlu1 %648 }
 0x17f   : > { %765 = vst.msk [vmem:[%s1303_s21 + $0x50] sm:$0xff] %vm753_vm4, %v739_v8  ;;  %v695_v49 = vsel %vm593_vm2, 0.0, %v649_v12 }
 0x180   : > { %v741_v13 = vadd.f32 %v1297_v31, %v710_v10  ;;  %v713_v47 = vadd.f32 %v695_v49, %v1243_v55  ;;  %v647_v14 = vpop.permute.xlu0 %646 }
 0x181   : > { %v743_v16 = vadd.f32 %v1297_v31, %v647_v14 }
 0x182   : > { %767 = vst.msk [vmem:[%s1303_s21 + $0x60] sm:$0xff] %vm753_vm4, %v741_v13  ;;  %v744_v18 = vadd.f32 %v1297_v31, %v713_v47  ;;  %v653_v19 = vpop.permute.xlu1 %652 }
 0x183   : > { %769 = vst.msk [vmem:[%s1303_s21 + $0x70] sm:$0x1] %vm756_vm3, %v743_v16  ;;  %v746_v58 = vadd.f32 %v1297_v31, %v653_v19 }
 0x184   : > { %770 = vst.msk [vmem:[%s1303_s21 + $0x78] sm:$0xff] %vm753_vm4, %v744_v18  ;;  %v645_v20 = vpop.permute.xlu0 %644 }
 0x185   : > { %772 = vst.msk [vmem:[%s1303_s21 + $0x88] sm:$0x1] %vm756_vm3, %v746_v58  ;;  %v711_v55 = vadd.f32 %v645_v20, %v1251_v0 }
 0x186   : > { %v651_v21 = vpop.permute.xlu1 %650 }
 0x187   : > { %v742_v22 = vadd.f32 %v1297_v31, %v711_v55  ;;  %v714_v24 = vadd.f32 %v651_v21, %v1249_v62 }
 0x188   : > { %v655_v25 = vpop.permute.xlu0 %654 }
 0x189   : > { %768 = vst.msk [vmem:[%s1303_s21 + $0x68] sm:$0xff] %vm753_vm4, %v742_v22  ;;  %v745_v27 = vadd.f32 %v1297_v31, %v714_v24  ;;  %v696_v28 = vsel %vm593_vm2, 0.0, %v655_v25 }
 0x18a   : > { %v716_v30 = vadd.f32 %v696_v28, %v1262_v11  ;;  %v661_v33 = vpop.permute.xlu1 %660 }
 0x18b   : > { %771 = vst.msk [vmem:[%s1303_s21 + $0x80] sm:$0xff] %vm753_vm4, %v745_v27  ;;  %v697_v0 = vsel %vm593_vm2, 0.0, %v661_v33 }
 0x18c   : > { %v747_v34 = vadd.f32 %v1297_v31, %v716_v30  ;;  %v719_v62 = vadd.f32 %v697_v0, %v1259_v7  ;;  %v657_v35 = vpop.permute.xlu0 %656 }
 0x18d   : > { %v717_v36 = vadd.f32 %v657_v35, %v1268_v17 }
 0x18e   : > { %773 = vst.msk [vmem:[%s1303_s21 + $0x90] sm:$0xff] %vm753_vm4, %v747_v34  ;;  %v750_v37 = vadd.f32 %v1297_v31, %v719_v62  ;;  %v663_v11 = vpop.permute.xlu1 %662 }
 0x18f   : > { %v748_v39 = vadd.f32 %v1297_v31, %v717_v36  ;;  %v720_v40 = vadd.f32 %v663_v11, %v1266_v15 }
 0x190   : > { %776 = vst.msk [vmem:[%s1303_s21 + $0xa8] sm:$0xff] %vm753_vm4, %v750_v37  ;;  %v659_v42 = vpop.permute.xlu0 %658 }
 0x191   : > { %774 = vst.msk [vmem:[%s1303_s21 + $0x98] sm:$0xff] %vm753_vm4, %v748_v39  ;;  %v751_v7 = vadd.f32 %v1297_v31, %v720_v40  ;;  %v749_v43 = vadd.f32 %v1297_v31, %v659_v42 }
 0x192   : > { %v665_v23 = vpop.permute.xlu1 %664 }
 0x193   : > { %777 = vst.msk [vmem:[%s1303_s21 + $0xb0] sm:$0xff] %vm753_vm4, %v751_v7  ;;  %v752_v17 = vadd.f32 %v1297_v31, %v665_v23 }
 0x194   : > { %775 = vst.msk [vmem:[%s1303_s21 + $0xa0] sm:$0x1] %vm756_vm3, %v749_v43 }
 0x195   : > { %778 = vst.msk [vmem:[%s1303_s21 + $0xb8] sm:$0x1] %vm756_vm3, %v752_v17 }
 0x196 PF: > { %s13_s16 = sadd.s32 1, %s1109_s16   ;;  %s1419_s12 = smov %s1101_s14 }
 0x197   : > { %p10_p8 = scmp.ge.s32.totalorder %s13_s16, 8   ;;  %s1420_s13 = smov %s1105_s15 }
 0x198   : > { %s1421_s14 = smov %s1424_s17  ;;  %s1422_s15 = smov %s1428_s18 }
 0x199   :  { %12 = sbr.rel (!%p10_p8) target bundleno = 3 (0x3), region = 64 }

// kernel: tile.8
= control target key start
LH: loop header
LB: loop body
LE: loop exit
PB: predicated region body
PF: predicated region fallthrough
CT: control target
= control target key end

     0   :  { %2 = vsyncpa [#allocation1], 0  ;;  %s44_s6 = smov [#allocation0]   ;;  %s70_s0 = inlined_call_operand.hbm [shape: f32[8], index: 0, kind: input, shape index: {}]   ;;  %s71_s1 = inlined_call_operand.vmem [shape: f32[4,8], index: 1, kind: output, shape index: {}]  }
   0x1   :  { %s9_s7 = sshll.u32 %s44_s6, 4  ;;  %s20_s10 = scalar_lea.hbm %s70_s0, 16  ;;  %s10_s7 = int_to_ptr.vmem [resolvable:$true] %s9_s7 }
   0x2   :  { %p21_p0 = scmp.ne.s32.totalorder %s70_s0, %s20_s10  ;;  %p24_p1 = scmp.lt.u32.totalorder %s20_s10, %s70_s0 }
   0x4   :  { %p26_p2 = pnand %p24_p1, %p21_p0 }
   0x6   :  { %29 = shalt.err (!%p26_p2)
}
   0x7   :  { %s30_s15 = scalar_lea.vmem %s10_s7, 16  ;;  %s34_s16 = scalar_lea.vmem %s10_s7, 32 }
   0x8   :  { %p31_p3 = scmp.ne.s32.totalorder %s10_s7, %s30_s15  ;;  %p35_p4 = scmp.lt.s32.totalorder %s10_s7, %s10_s7 }
   0x9   :  { %p36_p5 = scmp.lt.s32.totalorder %s34_s16, %s30_s15 }
   0xb   :  { %p37_p6 = por %p36_p5, %p35_p4 }
   0xd   :  { %p38_p7 = pnand %p37_p6, %p31_p3 }
   0xf   :  { %41 = shalt.err (!%p38_p7)
}
  0x10   :  { %12 = dma.hbm_to_vmem [thread:$0]  %s70_s0, 16, %s10_s7, [#allocation1]  }
  0x11   :  { %42 = dma.done.wait [#allocation1], 16  }
  0x12   :  { %43 = vsyncadd [#allocation1], 4294967280  ;;  %v16_v0 = vld [vmem:[#allocation0] ss:$0 sm:$0xff] }
  0x13   :  { %17 = vst [vmem:[%s71_s1] sm:$0xf] %v16_v0 }
  0x14   :  { %18 = vsyncpa [#allocation1], 1 }

// kernel: tile.9
= control target key start
LH: loop header
LB: loop body
LE: loop exit
PB: predicated region body
PF: predicated region fallthrough
CT: control target
= control target key end

     0   :  { %vm7_vm0 = vcmask 64512   ;;  %s37_s8 = smov 8   ;;  %s38_s9 = smov 16   ;;  %vm13_vm1 = vcmask 261312   ;;  %vm19_vm2 = vcmask 195712   ;;  %vm25_vm3 = vcmask 130112   ;;  %s55_s0 = inlined_call_operand.vmem [shape: f32[4,8], index: 0, kind: input, shape index: {}]   ;;  %s56_s1 = inlined_call_operand.vmem [shape: f32[1,32], index: 1, kind: output, shape index: {}]  }
   0x1   :  { %v4_v0 = vld [vmem:[%s55_s0] sm:$0xf]  ;;  %s36_s0 = smov 24  }
   0x2   :  { %5 = vst [vmem:[#allocation1] sm:$0xf] %v4_v0 }
   0x9   :  { %v10_v1 = vld [vmem:[#allocation1 + $0x3] sm:$0x1]   ;;  %v22_v2 = vld [vmem:[#allocation1 + $0x1] sm:$0x1]   ;;  %v6_v3 = vld [vmem:[#allocation1] sm:$0x1]  }
   0xa   :  { %11 = vrot.lane.b32.xlu0 %v10_v1, %s36_s0  ;;  %23 = vrot.lane.b32.xlu1 %v22_v2, %s37_s8  ;;  %v16_v4 = vld [vmem:[#allocation1 + $0x2] sm:$0x1]   ;;  %8 = vst.msk [vmem:[#allocation0] sm:$0x1] %vm7_vm0, %v6_v3  }
   0xe   :  { %17 = vrot.lane.b32.xlu0 %v16_v4, %s38_s9 }
  0x7c   :  { %v12_v5 = vpop.permute.xlu0 %11   ;;  %v24_v6 = vpop.permute.xlu1 %23  }
  0x7d   :  { %14 = vst.msk [vmem:[#allocation0] sm:$0x1] %vm13_vm1, %v12_v5  }
  0x80   :  { %v18_v7 = vpop.permute.xlu0 %17  }
  0x81   :  { %20 = vst.msk [vmem:[#allocation0] sm:$0x1] %vm19_vm2, %v18_v7  }
  0x82   :  { %26 = vst.msk [vmem:[#allocation0] sm:$0x1] %vm25_vm3, %v24_v6  }
  0x89   :  { %v30_v8 = vld [vmem:[#allocation0] sm:$0x1] }
  0x8a   :  { %32 = vst [vmem:[%s56_s1] sm:$0x1] %v30_v8 }

// kernel: lora_conv_transpose2d.1
= control target key start
LH: loop header
LB: loop body
LE: loop exit
PB: predicated region body
PF: predicated region fallthrough
CT: control target
= control target key end

     0   :  { %s1132_s12 = smov 0   ;;  %s1134_s13 = smov 0   ;;  %s1415_s0 = inlined_call_operand.vmem [shape: bf16[2,3,9,16,4], index: 0, kind: input, shape index: {}]   ;;  %s1416_s1 = inlined_call_operand.vmem [shape: bf16[2,4,64], index: 1, kind: input, shape index: {}]   ;;  %s1417_s2 = inlined_call_operand.vmem [shape: f32[1,32], index: 2, kind: input, shape index: {}]   ;;  %s1418_s3 = inlined_call_operand.vmem [shape: f32[2,24,17,32], index: 3, kind: output, shape index: {}]  }
   0x1   :  { %s1136_s14 = smov 0   ;;  %s1138_s15 = smov 0  }
   0x2   :  { %s1140_s16 = smov 0  }
   0x3 LB: > { %s22_s17 = sadd.s32 1, %s1101_s14  ;;  %s25_s18 = sadd.s32 1, %s1105_s15  ;;  %s1109_s16 = sphi %s1140_s16, %s13_s16   ;;  %s1105_s15 = sphi %s1138_s15, %s1422_s15   ;;  %s1101_s14 = sphi %s1136_s14, %s1421_s14   ;;  %s1097_s13 = sphi %s1134_s13, %s1420_s13   ;;  %s1093_s12 = sphi %s1132_s12, %s1419_s12  }
   0x4   : > { %p23_p0 = scmp.ge.s32.totalorder %s22_s17, 3  ;;  %p882_p1 = scmp.ge.s32.totalorder %s1109_s16, 1 }
   0x5   : > { %p157_p2 = scmp.lt.s32.totalorder %s1109_s16, 7 }
   0x6   : > { %s1424_s17 = smov (%p23_p0, %s22_s17), 0  ;;  %s1426_s18 = smov (!%p23_p0, %s25_s18), %s1105_s15 }
   0x7   : > { %p158_p3 = pnand %p882_p1, %p157_p2  ;;  %p27_p4 = scmp.ge.s32.totalorder %s1426_s18, 2 }
   0x8   : > { %v902_v0 = vld [vmem:[%s1416_s1 + $0x2] sm:$0x3] (!%p158_p3)  ;;  %vm312_vm0 = vcmask (!%p158_p3), 1041408   ;;  %v228_v1 = vld [vmem:[%s1416_s1] sm:$0x3] (!%p158_p3)  ;;  %p190_p5 = scmp.lt.s32.totalorder (!%p158_p3), %s1097_s13, 1 }
   0x9   : > { %s1428_s18 = smov (%p27_p4, %s1426_s18), 0  ;;  %161 = sbr.rel (%p158_p3) target bundleno = 406 (0x196), region = 32 }
   0xa   : > { %1008 = vmatprep.subr.msk.bf16.mxu1 (!%p158_p3), %vm312_vm0, %v902_v0  ;;  %1009 = vmatprep.subr.msk.bf16.mxu0 (!%p158_p3), %vm312_vm0, %v228_v1  ;;  %v314_v2 = vsel (!%p158_p3), %vm312_vm0, %v902_v0, 0  ;;  %v478_v3 = vsel (!%p158_p3), %vm312_vm0, %v228_v1, 0  ;;  %p192_p6 = scmp.lt.s32.totalorder (!%p158_p3), %s1093_s12, 2  ;;  %vm287_vm1 = vcmask (!%p158_p3), 31744   ;;  %s1111_s4 = smov (!%p158_p3), 96   ;;  %vm593_vm2 = vcmask (!%p158_p3), 1040384  }
   0xb   : > { %957 = vmatpush3.bf16.msra.mxu1 (!%p158_p3), %v314_v2  ;;  %975 = vmatpush3.bf16.msra.mxu0 (!%p158_p3), %v478_v3  ;;  %s884_s5 = sshll.u32 (!%p158_p3), %s1093_s12, 3  ;;  %vm756_vm3 = vcmask (!%p158_p3), 253952   ;;  %vm753_vm4 = vcmask (!%p158_p3), 261120  }
   0xc   : > { %p202_p7 = scmp.lt.s32.totalorder (!%p158_p3), %s884_s5, 23 }
  0x10   : > { %s1430_s13 = smov (!%p190_p5, %s1097_s13), 1  ;;  %s1432_s5 = smov (!%p202_p7, %s884_s5), 23 }
  0x11   : > { %s193_s23 = scalar_select %p192_p6, %s1093_s12, 2 }
  0x12   : > { %s1011_s24 = smul.u32 54, %s1430_s13 }
  0x13   : > { %s1010_s25 = smul.u32 18, %s193_s23 }
  0x14   : > { %s1013_s6 = smul.u32 72, %s1430_s13 }
  0x15   : > { %s196_s26 = sadd.s32 %s1011_s24, %s1010_s25  ;;  %s1012_s7 = smul.u32 3, %s1432_s5 }
  0x16   : > { %s883_s27 = sshll.u32 %s196_s26, 2 }
  0x17   : > { %s1178_s30 = scalar_lea.vmem %s1415_s0, %s883_s27  ;;  %s206_s8 = sadd.s32 %s1013_s6, %s1012_s7 }
  0x18   : > { %v1055_v4 = vld [vmem:[%s1178_s30] sm:$0xff]   ;;  %v1056_v5 = vld [vmem:[%s1178_s30 + $0x8] sm:$0xff]   ;;  %v1058_v7 = vld [vmem:[%s1178_s30 + $0x10] sm:$0xff]   ;;  %s885_s9 = sshll.u32 %s206_s8, 3 }
  0x19   : > { %958 = vmatprep.mubr.msk.bf16.mxu1 %vm287_vm1, %v1055_v4  ;;  %v1057_v6 = vld [vmem:[%s1178_s30 + $0x8] sm:$0xff]   ;;  %976 = vmatprep.mubr.msk.bf16.mxu0 %vm287_vm1, %v1056_v5  ;;  %v1059_v8 = vld [vmem:[%s1178_s30 + $0x10] sm:$0xff]   ;;  %v1060_v9 = vld [vmem:[%s1178_s30 + $0x18] sm:$0xff]   ;;  %s1303_s21 = scalar_lea.vmem %s1418_s3, %s885_s9 }
  0x1a   : > { %959 = vmatmul.mubr.msk.bf16.vlgmr.msra.gmra.mrb[0].mxu1 %vm287_vm1, %v1057_v6  ;;  %977 = vmatmul.mubr.msk.bf16.vlgmr.msra.gmra.mrb[0].mxu0 %vm287_vm1, %v1058_v7  ;;  %v1061_v10 = vld [vmem:[%s1178_s30 + $0x18] sm:$0xff]   ;;  %v1062_v11 = vld [vmem:[%s1178_s30 + $0x20] sm:$0xff]   ;;  %v1064_v13 = vld [vmem:[%s1178_s30 + $0x28] sm:$0xff]  }
  0x1b   : > { %962 = vmatprep.mubr.msk.bf16.mxu1 %vm287_vm1, %v1059_v8  ;;  %980 = vmatprep.mubr.msk.bf16.mxu0 %vm287_vm1, %v1060_v9  ;;  %v1063_v12 = vld [vmem:[%s1178_s30 + $0x20] sm:$0xff]   ;;  %v1065_v14 = vld [vmem:[%s1178_s30 + $0x28] sm:$0xff]   ;;  %v1066_v15 = vld [vmem:[%s1178_s30 + $0x30] sm:$0xff]  }
  0x1c   : > { %v1067_v16 = vld [vmem:[%s1178_s30 + $0x30] sm:$0xff]   ;;  %v1068_v17 = vld [vmem:[%s1178_s30 + $0x38] sm:$0xff]   ;;  %v1070_v19 = vld [vmem:[%s1178_s30 + $0x40] sm:$0xff]  }
  0x1d   : > { %v1069_v18 = vld [vmem:[%s1178_s30 + $0x38] sm:$0xff]  }
  0x22   : > { %963 = vmatmul.mubr.msk.bf16.gmra.mrb[4].mxu1 %vm287_vm1, %v1061_v10  ;;  %981 = vmatmul.mubr.msk.bf16.gmra.mrb[4].mxu0 %vm287_vm1, %v1062_v11 }
  0x23   : > { %966 = vmatprep.mubr.msk.bf16.mxu1 %vm287_vm1, %v1063_v12  ;;  %984 = vmatprep.mubr.msk.bf16.mxu0 %vm287_vm1, %v1064_v13 }
  0x2a   : > { %967 = vmatmul.mubr.msk.bf16.gmra.mrb[8].mxu1 %vm287_vm1, %v1065_v14  ;;  %985 = vmatmul.mubr.msk.bf16.gmra.mrb[8].mxu0 %vm287_vm1, %v1066_v15 }
  0x2b   : > { %970 = vmatprep.mubr.msk.bf16.mxu1 %vm287_vm1, %v1067_v16  ;;  %988 = vmatprep.mubr.msk.bf16.mxu0 %vm287_vm1, %v1068_v17 }
  0x32   : > { %971 = vmatmul.mubr.msk.bf16.gmra.mrb[12].mxu1 %vm287_vm1, %v1069_v18  ;;  %989 = vmatmul.mubr.msk.bf16.gmra.mrb[12].mxu0 %vm287_vm1, %v1070_v19 }
  0xed   : > { %v960_v20 = vpop.f32.mrb[0].mxu1  ;;  %v978_v21 = vpop.f32.mrb[0].mxu0 }
  0xee   : > { %v350_v22 = vpop.f32.mrb[1].mxu1  ;;  %v1212_v23 = vadd.f32 %v978_v21, %v960_v20  ;;  %v514_v24 = vpop.f32.mrb[1].mxu0 }
  0xef   : > { %v961_v25 = vpop.f32.mrb[2].mxu1  ;;  %v1214_v26 = vadd.f32 %v514_v24, %v350_v22  ;;  %v979_v27 = vpop.f32.mrb[2].mxu0 }
  0xf0   : > { %v353_v28 = vpop.f32.mrb[3].mxu1  ;;  %v1216_v29 = vadd.f32 %v979_v27, %v961_v25  ;;  %v517_v30 = vpop.f32.mrb[3].mxu0  ;;  %v597_v31 = vrot.slane %v1212_v23, 7 }
  0xf1   : > { %v1219_v32 = vadd.f32 %v517_v30, %v353_v28  ;;  %v594_v34 = vrot.slane %v1214_v26, 7 }
  0xf2   : > { %624 = vrot.lane.b32.xlu0 %v597_v31, %s1111_s4  ;;  %v598_v33 = vrot.slane %v1216_v29, 7 }
  0xf3   : > { %v595_v45 = vrot.slane %v1219_v32, 7 }
  0xf4   : > { %628 = vrot.lane.b32.xlu1 %v598_v33, %s1111_s4  ;;  %v599_v44 = vsel %vm593_vm2, %v597_v31, %v598_v33  ;;  %v1297_v31 = vld [vmem:[%s1417_s2] ss:$0 sm:$0xff] }
  0xf5   : > { %v964_v35 = vpop.f32.mrb[4].mxu1  ;;  %v982_v36 = vpop.f32.mrb[4].mxu0  ;;  %v596_v51 = vsel %vm593_vm2, %v594_v34, %v595_v45 }
  0xf6   : > { %v366_v37 = vpop.f32.mrb[5].mxu1  ;;  %v1225_v38 = vadd.f32 %v982_v36, %v964_v35  ;;  %v530_v39 = vpop.f32.mrb[5].mxu0  ;;  %618 = vrot.lane.b32.xlu0 %v594_v34, %s1111_s4 }
  0xf7   : > { %v965_v40 = vpop.f32.mrb[6].mxu1  ;;  %v1228_v41 = vadd.f32 %v530_v39, %v366_v37  ;;  %v983_v42 = vpop.f32.mrb[6].mxu0 }
  0xf8   : > { %v369_v43 = vpop.f32.mrb[7].mxu1  ;;  %v603_v46 = vrot.slane %v1225_v38, 7  ;;  %v1233_v47 = vadd.f32 %v983_v42, %v965_v40  ;;  %626 = vrot.lane.b32.xlu1 %v599_v44, %s1111_s4  ;;  %v533_v48 = vpop.f32.mrb[7].mxu0 }
  0xf9   : > { %v1236_v49 = vadd.f32 %v533_v48, %v369_v43  ;;  %v600_v54 = vrot.slane %v1228_v41, 7 }
  0xfa   : > { %622 = vrot.lane.b32.xlu0 %v595_v45, %s1111_s4  ;;  %v604_v1 = vrot.slane %v1233_v47, 7 }
  0xfb   : > { %v601_v61 = vrot.slane %v1236_v49, 7 }
  0xfc   : > { %636 = vrot.lane.b32.xlu1 %v603_v46, %s1111_s4  ;;  %v605_v10 = vsel %vm593_vm2, %v603_v46, %v604_v1 }
  0xfd   : > { %v968_v50 = vpop.f32.mrb[8].mxu1  ;;  %v986_v52 = vpop.f32.mrb[8].mxu0  ;;  %v602_v3 = vsel %vm593_vm2, %v600_v54, %v601_v61 }
  0xfe   : > { %v382_v53 = vpop.f32.mrb[9].mxu1  ;;  %620 = vrot.lane.b32.xlu0 %v596_v51, %s1111_s4  ;;  %v1243_v55 = vadd.f32 %v986_v52, %v968_v50  ;;  %v546_v56 = vpop.f32.mrb[9].mxu0 }
  0xff   : > { %v969_v57 = vpop.f32.mrb[10].mxu1  ;;  %v1245_v58 = vadd.f32 %v546_v56, %v382_v53  ;;  %v987_v59 = vpop.f32.mrb[10].mxu0 }
 0x100   : > { %v385_v60 = vpop.f32.mrb[11].mxu1  ;;  %630 = vrot.lane.b32.xlu1 %v600_v54, %s1111_s4  ;;  %v1249_v62 = vadd.f32 %v987_v59, %v969_v57  ;;  %v549_v63 = vpop.f32.mrb[11].mxu0  ;;  %v609_v14 = vrot.slane %v1243_v55, 7 }
 0x101   : > { %v1251_v0 = vadd.f32 %v549_v63, %v385_v60  ;;  %v606_v6 = vrot.slane %v1245_v58, 7 }
 0x102   : > { %634 = vrot.lane.b32.xlu0 %v601_v61, %s1111_s4  ;;  %v610_v19 = vrot.slane %v1249_v62, 7 }
 0x103   : > { %v607_v18 = vrot.slane %v1251_v0, 7 }
 0x104   : > { %640 = vrot.lane.b32.xlu1 %v604_v1, %s1111_s4  ;;  %v611_v22 = vsel %vm593_vm2, %v609_v14, %v610_v19 }
 0x105   : > { %v972_v2 = vpop.f32.mrb[12].mxu1  ;;  %v990_v4 = vpop.f32.mrb[12].mxu0  ;;  %v608_v20 = vsel %vm593_vm2, %v606_v6, %v607_v18 }
 0x106   : > { %v398_v5 = vpop.f32.mrb[13].mxu1  ;;  %632 = vrot.lane.b32.xlu0 %v602_v3, %s1111_s4  ;;  %v1259_v7 = vadd.f32 %v990_v4, %v972_v2  ;;  %v562_v8 = vpop.f32.mrb[13].mxu0 }
 0x107   : > { %v973_v9 = vpop.f32.mrb[14].mxu1  ;;  %v1262_v11 = vadd.f32 %v562_v8, %v398_v5  ;;  %v991_v12 = vpop.f32.mrb[14].mxu0 }
 0x108   : > { %v401_v13 = vpop.f32.mrb[15].mxu1  ;;  %638 = vrot.lane.b32.xlu1 %v605_v10, %s1111_s4  ;;  %v1266_v15 = vadd.f32 %v991_v12, %v973_v9  ;;  %v565_v16 = vpop.f32.mrb[15].mxu0  ;;  %v615_v24 = vrot.slane %v1259_v7, 7 }
 0x109   : > { %v1268_v17 = vadd.f32 %v565_v16, %v401_v13  ;;  %v612_v21 = vrot.slane %v1262_v11, 7 }
 0x10a   : > { %642 = vrot.lane.b32.xlu0 %v606_v6, %s1111_s4  ;;  %v616_v27 = vrot.slane %v1266_v15, 7 }
 0x10b   : > { %v613_v25 = vrot.slane %v1268_v17, 7 }
 0x10c   : > { %648 = vrot.lane.b32.xlu1 %v609_v14, %s1111_s4  ;;  %v617_v30 = vsel %vm593_vm2, %v615_v24, %v616_v27 }
 0x10d   : > { %v614_v28 = vsel %vm593_vm2, %v612_v21, %v613_v25 }
 0x10e   : > { %646 = vrot.lane.b32.xlu0 %v607_v18, %s1111_s4 }
 0x110   : > { %652 = vrot.lane.b32.xlu1 %v610_v19, %s1111_s4 }
 0x112   : > { %644 = vrot.lane.b32.xlu0 %v608_v20, %s1111_s4 }
 0x114   : > { %650 = vrot.lane.b32.xlu1 %v611_v22, %s1111_s4 }
 0x116   : > { %654 = vrot.lane.b32.xlu0 %v612_v21, %s1111_s4 }
 0x118   : > { %660 = vrot.lane.b32.xlu1 %v615_v24, %s1111_s4 }
 0x11a   : > { %656 = vrot.lane.b32.xlu0 %v614_v28, %s1111_s4 }
 0x11c   : > { %662 = vrot.lane.b32.xlu1 %v617_v30, %s1111_s4 }
 0x11e   : > { %658 = vrot.lane.b32.xlu0 %v613_v25, %s1111_s4 }
 0x120   : > { %664 = vrot.lane.b32.xlu1 %v616_v27, %s1111_s4 }
 0x164   : > { %v625_v33 = vpop.permute.xlu0 %624 }
 0x165   : > { %v691_v34 = vsel %vm593_vm2, 0.0, %v625_v33 }
 0x166   : > { %v701_v35 = vadd.f32 %v691_v34, %v1212_v23  ;;  %v629_v36 = vpop.permute.xlu1 %628 }
 0x167   : > { %v734_v37 = vadd.f32 %v1297_v31, %v629_v36 }
 0x168   : > { %v732_v39 = vadd.f32 %v1297_v31, %v701_v35  ;;  %v619_v40 = vpop.permute.xlu0 %618 }
 0x169   : > { %760 = vst.msk [vmem:[%s1303_s21 + $0x28] sm:$0x1] %vm756_vm3, %v734_v37  ;;  %v690_v42 = vsel %vm593_vm2, 0.0, %v619_v40 }
 0x16a   : > { %758 = vst.msk [vmem:[%s1303_s21 + $0x18] sm:$0xff] %vm753_vm4, %v732_v39  ;;  %v698_v43 = vadd.f32 %v690_v42, %v1214_v26  ;;  %v627_v23 = vpop.permute.xlu1 %626 }
 0x16b   : > { %v702_v44 = vadd.f32 %v627_v23, %v1216_v29 }
 0x16c   : > { %v729_v45 = vadd.f32 %v1297_v31, %v698_v43  ;;  %v623_v46 = vpop.permute.xlu0 %622 }
 0x16d   : > { %v733_v48 = vadd.f32 %v1297_v31, %v702_v44  ;;  %v731_v50 = vadd.f32 %v1297_v31, %v623_v46 }
 0x16e   : > { %754 = vst.msk [vmem:[%s1303_s21] sm:$0xff] %vm753_vm4, %v729_v45  ;;  %v637_v51 = vpop.permute.xlu1 %636 }
 0x16f   : > { %759 = vst.msk [vmem:[%s1303_s21 + $0x20] sm:$0xff] %vm753_vm4, %v733_v48  ;;  %v693_v26 = vsel %vm593_vm2, 0.0, %v637_v51 }
 0x170   : > { %757 = vst.msk [vmem:[%s1303_s21 + $0x10] sm:$0x1] %vm756_vm3, %v731_v50  ;;  %v707_v29 = vadd.f32 %v693_v26, %v1225_v38  ;;  %v621_v52 = vpop.permute.xlu0 %620 }
 0x171   : > { %v699_v53 = vadd.f32 %v621_v52, %v1219_v32 }
 0x172   : > { %v738_v54 = vadd.f32 %v1297_v31, %v707_v29  ;;  %v631_v56 = vpop.permute.xlu1 %630 }
 0x173   : > { %v730_v57 = vadd.f32 %v1297_v31, %v699_v53  ;;  %v692_v59 = vsel %vm593_vm2, 0.0, %v631_v56 }
 0x174   : > { %764 = vst.msk [vmem:[%s1303_s21 + $0x48] sm:$0xff] %vm753_vm4, %v738_v54  ;;  %v704_v60 = vadd.f32 %v692_v59, %v1228_v41  ;;  %v635_v61 = vpop.permute.xlu0 %634 }
 0x175   : > { %755 = vst.msk [vmem:[%s1303_s21 + $0x8] sm:$0xff] %vm753_vm4, %v730_v57  ;;  %v737_v38 = vadd.f32 %v1297_v31, %v635_v61 }
 0x176   : > { %v735_v32 = vadd.f32 %v1297_v31, %v704_v60  ;;  %v641_v63 = vpop.permute.xlu1 %640 }
 0x177   : > { %763 = vst.msk [vmem:[%s1303_s21 + $0x40] sm:$0x1] %vm756_vm3, %v737_v38  ;;  %v740_v1 = vadd.f32 %v1297_v31, %v641_v63 }
 0x178   : > { %761 = vst.msk [vmem:[%s1303_s21 + $0x30] sm:$0xff] %vm753_vm4, %v735_v32  ;;  %v633_v2 = vpop.permute.xlu0 %632 }
 0x179   : > { %766 = vst.msk [vmem:[%s1303_s21 + $0x58] sm:$0x1] %vm756_vm3, %v740_v1  ;;  %v705_v41 = vadd.f32 %v633_v2, %v1236_v49 }
 0x17a   : > { %v639_v3 = vpop.permute.xlu1 %638 }
 0x17b   : > { %v736_v4 = vadd.f32 %v1297_v31, %v705_v41  ;;  %v708_v5 = vadd.f32 %v639_v3, %v1233_v47 }
 0x17c   : > { %v643_v6 = vpop.permute.xlu0 %642 }
 0x17d   : > { %762 = vst.msk [vmem:[%s1303_s21 + $0x38] sm:$0xff] %vm753_vm4, %v736_v4  ;;  %v739_v8 = vadd.f32 %v1297_v31, %v708_v5  ;;  %v694_v9 = vsel %vm593_vm2, 0.0, %v643_v6 }
 0x17e   : > { %v710_v10 = vadd.f32 %v694_v9, %v1245_v58  ;;  %v649_v12 = vpop.permute.xlu1 %648 }
 0x17f   : > { %765 = vst.msk [vmem:[%s1303_s21 + $0x50] sm:$0xff] %vm753_vm4, %v739_v8  ;;  %v695_v49 = vsel %vm593_vm2, 0.0, %v649_v12 }
 0x180   : > { %v741_v13 = vadd.f32 %v1297_v31, %v710_v10  ;;  %v713_v47 = vadd.f32 %v695_v49, %v1243_v55  ;;  %v647_v14 = vpop.permute.xlu0 %646 }
 0x181   : > { %v743_v16 = vadd.f32 %v1297_v31, %v647_v14 }
 0x182   : > { %767 = vst.msk [vmem:[%s1303_s21 + $0x60] sm:$0xff] %vm753_vm4, %v741_v13  ;;  %v744_v18 = vadd.f32 %v1297_v31, %v713_v47  ;;  %v653_v19 = vpop.permute.xlu1 %652 }
 0x183   : > { %769 = vst.msk [vmem:[%s1303_s21 + $0x70] sm:$0x1] %vm756_vm3, %v743_v16  ;;  %v746_v58 = vadd.f32 %v1297_v31, %v653_v19 }
 0x184   : > { %770 = vst.msk [vmem:[%s1303_s21 + $0x78] sm:$0xff] %vm753_vm4, %v744_v18  ;;  %v645_v20 = vpop.permute.xlu0 %644 }
 0x185   : > { %772 = vst.msk [vmem:[%s1303_s21 + $0x88] sm:$0x1] %vm756_vm3, %v746_v58  ;;  %v711_v55 = vadd.f32 %v645_v20, %v1251_v0 }
 0x186   : > { %v651_v21 = vpop.permute.xlu1 %650 }
 0x187   : > { %v742_v22 = vadd.f32 %v1297_v31, %v711_v55  ;;  %v714_v24 = vadd.f32 %v651_v21, %v1249_v62 }
 0x188   : > { %v655_v25 = vpop.permute.xlu0 %654 }
 0x189   : > { %768 = vst.msk [vmem:[%s1303_s21 + $0x68] sm:$0xff] %vm753_vm4, %v742_v22  ;;  %v745_v27 = vadd.f32 %v1297_v31, %v714_v24  ;;  %v696_v28 = vsel %vm593_vm2, 0.0, %v655_v25 }
 0x18a   : > { %v716_v30 = vadd.f32 %v696_v28, %v1262_v11  ;;  %v661_v33 = vpop.permute.xlu1 %660 }
 0x18b   : > { %771 = vst.msk [vmem:[%s1303_s21 + $0x80] sm:$0xff] %vm753_vm4, %v745_v27  ;;  %v697_v0 = vsel %vm593_vm2, 0.0, %v661_v33 }
 0x18c   : > { %v747_v34 = vadd.f32 %v1297_v31, %v716_v30  ;;  %v719_v62 = vadd.f32 %v697_v0, %v1259_v7  ;;  %v657_v35 = vpop.permute.xlu0 %656 }
 0x18d   : > { %v717_v36 = vadd.f32 %v657_v35, %v1268_v17 }
 0x18e   : > { %773 = vst.msk [vmem:[%s1303_s21 + $0x90] sm:$0xff] %vm753_vm4, %v747_v34  ;;  %v750_v37 = vadd.f32 %v1297_v31, %v719_v62  ;;  %v663_v11 = vpop.permute.xlu1 %662 }
 0x18f   : > { %v748_v39 = vadd.f32 %v1297_v31, %v717_v36  ;;  %v720_v40 = vadd.f32 %v663_v11, %v1266_v15 }
 0x190   : > { %776 = vst.msk [vmem:[%s1303_s21 + $0xa8] sm:$0xff] %vm753_vm4, %v750_v37  ;;  %v659_v42 = vpop.permute.xlu0 %658 }
 0x191   : > { %774 = vst.msk [vmem:[%s1303_s21 + $0x98] sm:$0xff] %vm753_vm4, %v748_v39  ;;  %v751_v7 = vadd.f32 %v1297_v31, %v720_v40  ;;  %v749_v43 = vadd.f32 %v1297_v31, %v659_v42 }
 0x192   : > { %v665_v23 = vpop.permute.xlu1 %664 }
 0x193   : > { %777 = vst.msk [vmem:[%s1303_s21 + $0xb0] sm:$0xff] %vm753_vm4, %v751_v7  ;;  %v752_v17 = vadd.f32 %v1297_v31, %v665_v23 }
 0x194   : > { %775 = vst.msk [vmem:[%s1303_s21 + $0xa0] sm:$0x1] %vm756_vm3, %v749_v43 }
 0x195   : > { %778 = vst.msk [vmem:[%s1303_s21 + $0xb8] sm:$0x1] %vm756_vm3, %v752_v17 }
 0x196 PF: > { %s13_s16 = sadd.s32 1, %s1109_s16   ;;  %s1419_s12 = smov %s1101_s14 }
 0x197   : > { %p10_p8 = scmp.ge.s32.totalorder %s13_s16, 8   ;;  %s1420_s13 = smov %s1105_s15 }
 0x198   : > { %s1421_s14 = smov %s1424_s17  ;;  %s1422_s15 = smov %s1428_s18 }
 0x199   :  { %12 = sbr.rel (!%p10_p8) target bundleno = 3 (0x3), region = 64 }

</bundles_post_ra>
